<compile_context>
chip_gen: v7x
topology: tpu7x:2x2x1
jax: 0.10.0
libtpu: 0.0.40
codegen_flags: <defaults>
</compile_context>

<pallas_src>
import jax
import jax.numpy as jnp
from jax import lax
from jax.experimental import pallas as pl
from jax.experimental.pallas import tpu as pltpu

BN_EPS = 1e-5


def fc_bn_relu_kernel(x_ref, w_ref, gamma_ref, beta_ref, o_ref):
    # Linear (no bias): (B, F_in) x (TN, F_in) -> (B, TN) on the MXU,
    # contracting the last dim of both operands (no transpose materialized).
    y = lax.dot_general(
        x_ref[...], w_ref[...],
        dimension_numbers=(((1,), (1,)), ((), ())),
        preferred_element_type=jnp.float32,
    )

    # BatchNorm1d (training mode): stats over the full batch (axis 0),
    # biased variance. The centered tensor is reused for var and y_hat.
    inv_b = 1.0 / y.shape[0]
    mean = jnp.sum(y, axis=0, keepdims=True) * inv_b          # (1, TN)
    centered = y - mean
    var = jnp.sum(centered * centered, axis=0, keepdims=True) * inv_b
    y_hat = centered * lax.rsqrt(var + BN_EPS)

    # Affine + ReLU.
    out = y_hat * gamma_ref[...] + beta_ref[...]
    o_ref[...] = jnp.maximum(out, 0.0).astype(o_ref.dtype)


def _pick_tn(f_out, f_in, b, budget_bytes=24 << 20):
    """Pick a lane-dense F_out tile that keeps double-buffered tiles in budget
    (conservative enough for v7x's smaller VMEM)."""
    if f_out <= 512:
        return f_out
    tn = 512
    while tn > 128 and 4 * (2 * f_in * tn + 2 * b * f_in + 2 * b * tn) > budget_bytes:
        tn -= 128
    return tn


def fc_layer_forward(x, weight, gamma, beta, *, tn=None):
    """x: (B, F_in) f32, weight: (F_out, F_in) f32 (PyTorch layout),
    gamma/beta: (F_out,) f32. Returns (B, F_out) f32."""
    B, F_in = x.shape
    F_out = weight.shape[0]

    if tn is None:
        tn = _pick_tn(F_out, F_in, B)
    tn = min(tn, F_out)
    grid = (pl.cdiv(F_out, tn),)

    gamma2 = gamma.reshape(1, F_out)
    beta2 = beta.reshape(1, F_out)

    # Scoped VMEM sized from the chosen tiles (double-buffered) + headroom.
    vmem_bytes = 4 * (2 * tn * F_in + 2 * B * F_in + 2 * B * tn + 4 * tn) + (4 << 20)
    vmem_bytes = int(min(max(vmem_bytes, 8 << 20), 48 << 20))

    # TODO(synk): cast x/weight to bf16 for the MXU on big layers (keep f32 acc);
    # kept f32 here so the small-shape reference check stays tight.
    return pl.pallas_call(
        fc_bn_relu_kernel,
        out_shape=jax.ShapeDtypeStruct((B, F_out), jnp.float32),
        grid=grid,
        in_specs=[
            pl.BlockSpec((B, F_in), lambda j: (0, 0)),      # x resident (full batch)
            pl.BlockSpec((tn, F_in), lambda j: (j, 0)),     # weight tile (F_out-major)
            pl.BlockSpec((1, tn), lambda j: (0, j)),        # gamma tile
            pl.BlockSpec((1, tn), lambda j: (0, j)),        # beta tile
        ],
        out_specs=pl.BlockSpec((B, tn), lambda j: (0, j)),  # lane-dense output tile
        compiler_params=pltpu.CompilerParams(
            dimension_semantics=("parallel",),
            vmem_limit_bytes=vmem_bytes,
        ),
    )(x, weight, gamma2, beta2)


if __name__ == "__main__":
    # Small shapes consistent with the module; tn=256 so the F_out grid (=2) is exercised.
    B, F_in, F_out = 8, 256, 512

    key = jax.random.PRNGKey(0)
    kx, kw = jax.random.split(key)

    x = jax.random.normal(kx, (B, F_in), dtype=jnp.float32)

    # task == 'ImageNet' init: N(0, 0.01) weight, no bias (PyTorch (F_out, F_in) layout).
    weight = 0.01 * jax.random.normal(kw, (F_out, F_in), dtype=jnp.float32)
    # BatchNorm1d affine params (default init: gamma=1, beta=0).
    gamma = jnp.ones((F_out,), dtype=jnp.float32)
    beta = jnp.zeros((F_out,), dtype=jnp.float32)

    out = fc_layer_forward(x, weight, gamma, beta, tn=256)
    out = jax.block_until_ready(out)

    # Pure-JAX reference (training-mode BatchNorm1d + ReLU).
    y_ref = x @ weight.T
    m = jnp.mean(y_ref, axis=0, keepdims=True)
    v = jnp.mean((y_ref - m) ** 2, axis=0, keepdims=True)
    ref = jnp.maximum((y_ref - m) / jnp.sqrt(v + BN_EPS) * gamma + beta, 0.0)
    assert out.shape == ref.shape, "shape mismatch vs reference"
    assert jnp.allclose(out, ref, atol=1e-4, rtol=1e-4), "mismatch vs reference"

    print("KERNEL_OK")
</pallas_src>

<mosaic_0001>
module attributes {stable_mosaic.version = 11 : i64} {
  func.func @fc_bn_relu_kernel(%arg0: i32, %arg1: memref<8x256xf32, #tpu.memory_space<vmem>>, %arg2: memref<256x256xf32, #tpu.memory_space<vmem>>, %arg3: memref<1x256xf32, #tpu.memory_space<vmem>>, %arg4: memref<1x256xf32, #tpu.memory_space<vmem>>, %arg5: memref<8x256xf32, #tpu.memory_space<vmem>>) attributes {dimension_semantics = [#tpu.dimension_semantics<parallel>], iteration_bounds = array<i64: 2>, scalar_prefetch = 0 : i64, scratch_operands = 0 : i64, tpu.core_type = #tpu.core_type<tc>, window_params = [{pipeline_mode = #tpu.pipeline_mode<synchronous>, transform_indices = @transform_0, window_bounds = array<i64: 8, 256>}, {transform_indices = @transform_1, window_bounds = array<i64: 256, 256>}, {transform_indices = @transform_2, window_bounds = array<i64: 1, 256>}, {transform_indices = @transform_3, window_bounds = array<i64: 1, 256>}, {transform_indices = @transform_4, window_bounds = array<i64: 8, 256>}]} {
    %c0 = arith.constant 0 : index
    %c0_0 = arith.constant 0 : index
    %0 = vector.load %arg1[%c0, %c0_0] : memref<8x256xf32, #tpu.memory_space<vmem>>, vector<8x256xf32>
    %c0_1 = arith.constant 0 : index
    %c0_2 = arith.constant 0 : index
    %1 = vector.load %arg2[%c0_1, %c0_2] : memref<256x256xf32, #tpu.memory_space<vmem>>, vector<256x256xf32>
    %cst = arith.constant dense<0.000000e+00> : vector<8x256xf32>
    %2 = tpu.matmul %0, %1, %cst {dimension_numbers = #tpu.dot_dimension_numbers<[1], [1], [0], [0], [0, 0, 1, 0], [], []>} : vector<8x256xf32>, vector<256x256xf32>, vector<8x256xf32> -> vector<8x256xf32>
    %cst_3 = arith.constant dense<0.000000e+00> : vector<256xf32>
    %3 = vector.multi_reduction <add>, %2, %cst_3 [0] : vector<8x256xf32> to vector<256xf32>
    %4 = vector.shape_cast %3 : vector<256xf32> to vector<1x256xf32>
    %cst_4 = arith.constant 1.250000e-01 : f32
    %5 = vector.broadcast %cst_4 : f32 to vector<1x256xf32>
    %6 = arith.mulf %4, %5 : vector<1x256xf32>
    %7 = vector.broadcast %6 : vector<1x256xf32> to vector<8x256xf32>
    %8 = arith.subf %2, %7 : vector<8x256xf32>
    %9 = arith.mulf %8, %8 : vector<8x256xf32>
    %cst_5 = arith.constant dense<0.000000e+00> : vector<256xf32>
    %10 = vector.multi_reduction <add>, %9, %cst_5 [0] : vector<8x256xf32> to vector<256xf32>
    %11 = vector.shape_cast %10 : vector<256xf32> to vector<1x256xf32>
    %cst_6 = arith.constant 1.250000e-01 : f32
    %12 = vector.broadcast %cst_6 : f32 to vector<1x256xf32>
    %13 = arith.mulf %11, %12 : vector<1x256xf32>
    %cst_7 = arith.constant 9.99999974E-6 : f32
    %14 = vector.broadcast %cst_7 : f32 to vector<1x256xf32>
    %15 = arith.addf %13, %14 : vector<1x256xf32>
    %16 = math.rsqrt %15 : vector<1x256xf32>
    %17 = vector.broadcast %16 : vector<1x256xf32> to vector<8x256xf32>
    %18 = arith.mulf %8, %17 : vector<8x256xf32>
    %c0_8 = arith.constant 0 : index
    %c0_9 = arith.constant 0 : index
    %19 = vector.load %arg3[%c0_8, %c0_9] : memref<1x256xf32, #tpu.memory_space<vmem>>, vector<1x256xf32>
    %20 = vector.broadcast %19 : vector<1x256xf32> to vector<8x256xf32>
    %21 = arith.mulf %18, %20 : vector<8x256xf32>
    %c0_10 = arith.constant 0 : index
    %c0_11 = arith.constant 0 : index
    %22 = vector.load %arg4[%c0_10, %c0_11] : memref<1x256xf32, #tpu.memory_space<vmem>>, vector<1x256xf32>
    %23 = vector.broadcast %22 : vector<1x256xf32> to vector<8x256xf32>
    %24 = arith.addf %21, %23 : vector<8x256xf32>
    %cst_12 = arith.constant 0.000000e+00 : f32
    %25 = vector.broadcast %cst_12 : f32 to vector<8x256xf32>
    %26 = arith.maximumf %24, %25 : vector<8x256xf32>
    %c0_13 = arith.constant 0 : index
    %c0_14 = arith.constant 0 : index
    %27 = vector.load %arg5[%c0_13, %c0_14] : memref<8x256xf32, #tpu.memory_space<vmem>>, vector<8x256xf32>
    tpu.vector_store %arg5[%c0_13, %c0_14], %26 {strides = array<i32>} : memref<8x256xf32, #tpu.memory_space<vmem>>, vector<8x256xf32>,
    return
  }
  func.func @transform_0(%arg0: i32) -> (i32, i32) {
    %c0_i32 = arith.constant 0 : i32
    %c0_i32_0 = arith.constant 0 : i32
    %c0_i32_1 = arith.constant 0 : i32
    return %c0_i32, %c0_i32_0 : i32, i32
  }
  func.func @transform_1(%arg0: i32) -> (i32, i32) {
    %c0_i32 = arith.constant 0 : i32
    %c0_i32_0 = arith.constant 0 : i32
    return %arg0, %c0_i32 : i32, i32
  }
  func.func @transform_2(%arg0: i32) -> (i32, i32) {
    %c0_i32 = arith.constant 0 : i32
    %c0_i32_0 = arith.constant 0 : i32
    return %c0_i32, %arg0 : i32, i32
  }
  func.func @transform_3(%arg0: i32) -> (i32, i32) {
    %c0_i32 = arith.constant 0 : i32
    %c0_i32_0 = arith.constant 0 : i32
    return %c0_i32, %arg0 : i32, i32
  }
  func.func @transform_4(%arg0: i32) -> (i32, i32) {
    %c0_i32 = arith.constant 0 : i32
    %c0_i32_0 = arith.constant 0 : i32
    return %c0_i32, %arg0 : i32, i32
  }
}

</mosaic_0001>

<bundles_post_ra>
// kernel: tpu_custom_call.1
= control target key start
LH: loop header
LB: loop body
LE: loop exit
PB: predicated region body
PF: predicated region fallthrough
CT: control target
= control target key end

     0   :  { %9 = vsyncpa [#allocation3], 0  ;;  %s1171_s0 = inlined_call_operand.hbm [shape: f32[8,256], index: 0, kind: input, shape index: {}]   ;;  %s1172_s1 = inlined_call_operand.hbm [shape: f32[512,256], index: 1, kind: input, shape index: {}]   ;;  %s1173_s2 = inlined_call_operand.vmem [shape: f32[1,512], index: 2, kind: input, shape index: {}]   ;;  %s1174_s3 = inlined_call_operand.vmem [shape: f32[1,512], index: 3, kind: input, shape index: {}]   ;;  %s1175_s4 = inlined_call_operand.hbm [shape: f32[8,512], index: 4, kind: output, shape index: {}]  }
   0x1   :  { %10 = vsyncpa [#allocation6], 0 }
   0x2   :  { %12 = vsyncpa [#allocation6 + $0x1], 0 }
   0x3   :  { %13 = vsyncpa [#allocation4], 0 }
   0x4   :  { %15 = vsyncpa [#allocation4 + $0x1], 0  ;;  %s901_s15 = smov 0   ;;  %s903_s16 = smov 0  }
   0x5   :  { %s905_s17 = smov 0   ;;  %s907_s18 = smov 0  }
   0x6 LB: > { %s922_s19 = sadd.s32 4294967295, %s869_s18   ;;  %s592_s20 = sadd.s32 4294967294, %s869_s18   ;;  %s869_s18 = sphi %s907_s18, %s1200_s18   ;;  %s865_s17 = sphi %s905_s17, %s1199_s17   ;;  %s861_s16 = sphi %s903_s16, %s1198_s16   ;;  %s857_s15 = sphi %s901_s15, %s1197_s15  }
   0x7   : > { %s926_s21 = sadd.s32 1, %s869_s18   ;;  %s49_s22 = sadd.s32 1, %s865_s17 }
   0x8   : > { %s46_s23 = ssub.s32 %s869_s18, %s926_s21  ;;  %p56_p0 = scmp.ne.s32.totalorder %s865_s17, %s861_s16 }
   0x9   : > { %p47_p1 = scmp.eq.s32.totalorder %s46_s23, 0  ;;  %p57_p2 = scmp.eq.s32.totalorder %s869_s18, 0 }
   0xa   : > { %p62_p3 = scmp.ne.s32.totalorder %s861_s16, %s857_s15  ;;  %p1176_p4 = scmp.eq.s32.totalorder %s922_s19, 0 }
   0xb   : > { %s938_s24 = scalar_select %p47_p1, %s865_s17, %s49_s22  }
   0xc   : > { %p940_p5 = por %p57_p2, %p56_p0  ;;  %p946_p6 = por %p1176_p4, %p62_p3 }
   0xd   : > { %p138_p7 = scmp.eq.s32.totalorder %s922_s19, 1  ;;  %p144_p8 = scmp.eq.s32.totalorder %s592_s20, 1 }
   0xe   : > { %s1182_s26 = scalar_select %p946_p6, 1, 0 }
   0xf   : > { %p593_p9 = scmp.ge.s32.totalorder %s869_s18, 1  ;;  %p151_p10 = scmp.lt.s32.totalorder %s869_s18, 3 }
  0x10   : > { %p953_p11 = por %p138_p7, %p56_p0  ;;  %p957_p12 = por %p144_p8, %p62_p3 }
  0x11   : > { %p961_p13 = pnand %p593_p9, %p151_p10  ;;  %s871_s30 = smov [#allocation2]  }
  0x12   : > { %s1183_s27 = scalar_select %p953_p11, 1, 0 }
  0x13   : > { %s1184_s28 = scalar_select %p957_p12, 1, 0 }
  0x14   : > { %s1185_s29 = scalar_select %p961_p13, 1, 0 }
  0x15   : > { %p686_p2 = pneg %p961_p13  ;;  %s164_s5 = sshll.u32 %s871_s30, 4  ;;  %s165_s5 = int_to_ptr.vmem [resolvable:$true] %s164_s5 }
  0x16   : > { %p699_p4 = scmp.lt.s32.totalorder %s869_s18, 2  ;;  %p1186_p0 = scmp.eq.s32.totalorder %s922_s19, 0 }
  0x17   : > { %s175_s7 = sand.u32 1, %s865_s17   ;;  %s741_s12 = scalar_lea.hbm %s1171_s0, 256 }
  0x18   : > { %p971_p7 = pnand %p686_p2, %p1186_p0  ;;  %p978_p3 = pnand %p699_p4, %p940_p5 }
  0x19   : > { %s596_s9 = sshll.u32 %s175_s7, 9  ;;  %p742_p8 = scmp.ne.s32.totalorder %s1171_s0, %s741_s12 }
  0x1a   : > { %s1188_s8 = scalar_select %p978_p3, 1, 0 }
  0x1b   : > { %p743_p9 = pneg %p971_p7  ;;  %p748_p4 = scmp.lt.u32.totalorder %s741_s12, %s1171_s0 }
  0x1d   : > { %p744_p10 = pnand %p743_p9, %p742_p8 }
  0x1f   : > { %p745_p2 = pneg %p744_p10 }
  0x21   : > { %p750_p5 = pnand %p748_p4, %p745_p2 }
  0x23   : > { %753 = shalt.err (!%p750_p5)
}
  0x24   : > { %s754_s23 = scalar_lea.vmem %s165_s5, 256  ;;  %p762_p11 = scmp.lt.s32.totalorder %s165_s5, %s165_s5 }
  0x25   : > { %p755_p0 = scmp.ne.s32.totalorder %s165_s5, %s754_s23  ;;  %p763_p6 = scmp.lt.s32.totalorder %s754_s23, %s754_s23 }
  0x27   : > { %p757_p1 = pnand %p755_p0, %p743_p9  ;;  %p764_p13 = por %p763_p6, %p762_p11 }
  0x29   : > { %p758_p12 = pneg %p757_p1 }
  0x2b   : > { %p765_p3 = pnand %p764_p13, %p758_p12 }
  0x2d   : > { %768 = shalt.err (!%p765_p3)
}
  0x2e   : > { %689 = dma.hbm_to_vmem [thread:$0]  (!%p971_p7), %s1171_s0, 256, %s165_s5, [#allocation3]  }
  0x2f   : > { %s612_s10 = sshll.u32 %s869_s18, 13  ;;  %s179_s11 = scalar_lea.vmem [#allocation5], %s596_s9 }
  0x30   : > { %s187_s12 = sshll.u32 %s179_s11, 4  ;;  %s1002_s20 = scalar_lea.hbm %s1172_s1, %s612_s10  ;;  %s1004_s12 = int_to_ptr.vmem [resolvable:$true] %s187_s12 }
  0x31   : > { %s1006_s6 = scalar_lea.sflag [#allocation6], %s175_s7  ;;  %s769_s22 = scalar_lea.hbm %s1002_s20, 8192 }
  0x32   : > { %p770_p6 = scmp.ne.s32.totalorder %s1002_s20, %s769_s22  ;;  %p1189_p11 = scmp.ne.s32.totalorder %s1188_s8, 0 }
  0x33   : > { %s774_s23 = scalar_lea.hbm %s1172_s1, 16384  ;;  %p775_p7 = scmp.lt.u32.totalorder %s1002_s20, %s1172_s1 }
  0x34   : > { %p771_p12 = pneg %p1189_p11  ;;  %p776_p3 = scmp.lt.u32.totalorder %s774_s23, %s769_s22 }
  0x35   : > { %p778_p9 = scmp.lt.u32.totalorder %s769_s22, %s1002_s20 }
  0x36   : > { %p772_p13 = pnand %p771_p12, %p770_p6  ;;  %p777_p8 = por %p776_p3, %p775_p7 }
  0x38   : > { %p773_p1 = pneg %p772_p13  ;;  %p779_p10 = por %p778_p9, %p777_p8 }
  0x3a   : > { %p780_p2 = pnand %p779_p10, %p773_p1 }
  0x3c   : > { %783 = shalt.err (!%p780_p2)
}
  0x3d   : > { %s784_s7 = scalar_lea.vmem %s1004_s12, 8192  ;;  %s872_s10 = smov [#allocation5]  }
  0x3e   : > { %p785_p4 = scmp.ne.s32.totalorder %s1004_s12, %s784_s7  ;;  %s789_s11 = sshll.u32 %s872_s10, 4  ;;  %s790_s11 = int_to_ptr.vmem [resolvable:$false] %s789_s11 }
  0x3f   : > { %s791_s13 = scalar_lea.vmem %s790_s11, 16384  ;;  %p792_p6 = scmp.lt.s32.totalorder %s1004_s12, %s790_s11 }
  0x40   : > { %p787_p5 = pnand %p785_p4, %p771_p12  ;;  %p793_p13 = scmp.lt.s32.totalorder %s791_s13, %s784_s7 }
  0x42   : > { %p788_p0 = pneg %p787_p5  ;;  %p794_p7 = por %p793_p13, %p792_p6 }
  0x44   : > { %p795_p3 = pnand %p794_p7, %p788_p0 }
  0x46   : > { %798 = shalt.err (!%p795_p3)
}
  0x47   : > { %s873_s14 = smov 256   ;;  %s874_s22 = smov 16  }
  0x48   : > { %693 = dma.hbm_to_vmem [thread:$0]  (!%p1189_p11), %s1002_s20, 8192, %s1004_s12, %s1006_s6, %s873_s14, %s873_s14, %s874_s22  }
  0x49   : > { %p1190_p12 = scmp.ne.s32.totalorder %s1185_s29, 0 }
  0x4a   : > { %p1191_p1 = scmp.eq.s32.totalorder (!%p1190_p12), %s922_s19, 0 }
  0x4b   : > { %215 = sbr.rel (%p1190_p12) target bundleno = 498 (0x1f2), region = 36 }
  0x52   : > { %844 = dma.done.wait (%p1191_p1), [#allocation3], 256   ;;  %p1192_p8 = pmov %p1191_p1 }
  0x53   : > { %s1041_s5 = sand.u32 1, %s861_s16   ;;  %p1193_p11 = scmp.ne.s32.totalorder %s1182_s26, 0 }
  0x54   : > { %846 = vsyncadd (%p1192_p8), [#allocation3], 4294967040  ;;  %s602_s9 = sshll.u32 %s1041_s5, 9  ;;  %s222_s23 = scalar_lea.sflag [#allocation6], %s1041_s5 }
  0x55   : > { %s1045_s25 = scalar_lea.vmem [#allocation5], %s602_s9 }
  0x56   : > { %848 = dma.done.wait (%p1193_p11), %s222_s23, 8192  }
  0x57   : > { %850 = vsyncadd (%p1193_p11), %s222_s23, 4294959104  ;;  %v273_v0 = vld [vmem:[%s1045_s25 + $0x8] sm:$0xff]  ;;  %v275_v1 = vld [vmem:[%s1045_s25 + $0x18] sm:$0xff]  ;;  %s604_s26 = sshll.u32 %s922_s19, 1  ;;  %s603_s7 = sshll.u32 %s1041_s5, 4 }
  0x58   : > { %v272_v2 = vld [vmem:[%s1045_s25] sm:$0xff]  ;;  %v614_v3 = vpack.c.bf16 %v275_v1, %v273_v0  ;;  %v274_v4 = vld [vmem:[%s1045_s25 + $0x10] sm:$0xff]  ;;  %v277_v5 = vld [vmem:[%s1045_s25 + $0x28] sm:$0xff]  ;;  %p260_p9 = scmp.lt.s32.totalorder %s604_s26, 3  ;;  %s613_s10 = sshll.u32 %s922_s19, 8 }
  0x59   : > { %v279_v6 = vld [vmem:[%s1045_s25 + $0x38] sm:$0xff]  ;;  %v616_v7 = vpack.c.bf16 %v274_v4, %v272_v2  ;;  %v276_v9 = vld [vmem:[%s1045_s25 + $0x20] sm:$0xff]  ;;  %v278_v10 = vld [vmem:[%s1045_s25 + $0x30] sm:$0xff]  ;;  %s257_s11 = scalar_lea.vmem [#allocation7], %s603_s7  ;;  %s1127_s9 = scalar_lea.hbm %s1175_s4, %s613_s10 }
  0x5a   : > { %v618_v8 = vpack.c.bf16 %v279_v6, %v277_v5  ;;  %615 = vmatprep.subr.bf16.mxu0 %v614_v3  ;;  %v281_v11 = vld [vmem:[%s1045_s25 + $0x48] sm:$0xff]  ;;  %v283_v12 = vld [vmem:[%s1045_s25 + $0x58] sm:$0xff]  ;;  %v620_v13 = vpack.c.bf16 %v278_v10, %v276_v9  ;;  %v280_v15 = vld [vmem:[%s1045_s25 + $0x40] sm:$0xff]  ;;  %s1202_s26 = smov (!%p260_p9, %s604_s26), 3  ;;  %s492_s13 = sshll.u32 %s257_s11, 4  ;;  %s1129_s13 = int_to_ptr.vmem [resolvable:$true] %s492_s13 }
  0x5b   : > { %617 = vmatpush1.bf16.xpose.msra.mxu0 %v616_v7  ;;  %v622_v14 = vpack.c.bf16 %v283_v12, %v281_v11  ;;  %v282_v16 = vld [vmem:[%s1045_s25 + $0x50] sm:$0xff]  ;;  %v285_v17 = vld [vmem:[%s1045_s25 + $0x68] sm:$0xff]  ;;  %v287_v18 = vld [vmem:[%s1045_s25 + $0x78] sm:$0xff]  ;;  %s262_s12 = scalar_lea.vmem %s1173_s2, %s1202_s26  ;;  %s267_s30 = scalar_lea.vmem %s1174_s3, %s1202_s26 }
  0x5c   : > { %619 = vmatprep.subr.bf16.mxu0 %v618_v8  ;;  %v624_v19 = vpack.c.bf16 %v282_v16, %v280_v15  ;;  %v626_v20 = vpack.c.bf16 %v287_v18, %v285_v17  ;;  %v284_v21 = vld [vmem:[%s1045_s25 + $0x60] sm:$0xff]  ;;  %v286_v22 = vld [vmem:[%s1045_s25 + $0x70] sm:$0xff]  ;;  %v271_v23 = vld [vmem:[#allocation2 + $0x8] sm:$0xff]  ;;  %s478_s23 = scalar_lea.sflag [#allocation4], %s1041_s5  ;;  %p1194_p2 = scmp.ne.s32.totalorder %s1183_s27, 0 }
  0x5d   : > { %v289_v24 = vld [vmem:[%s1045_s25 + $0x88] sm:$0xff]  ;;  %v291_v25 = vld [vmem:[%s1045_s25 + $0x98] sm:$0xff]  ;;  %400 = vmatprep.mubr.f32.mxu0 %v271_v23  ;;  %v628_v26 = vpack.c.bf16 %v286_v22, %v284_v21  ;;  %v288_v28 = vld [vmem:[%s1045_s25 + $0x80] sm:$0xff]  ;;  %s875_s19 = smov [#allocation7]  }
  0x5e   : > { %v630_v27 = vpack.c.bf16 %v291_v25, %v289_v24  ;;  %v290_v29 = vld [vmem:[%s1045_s25 + $0x90] sm:$0xff]  ;;  %v293_v30 = vld [vmem:[%s1045_s25 + $0xa8] sm:$0xff]  ;;  %v295_v31 = vld [vmem:[%s1045_s25 + $0xb8] sm:$0xff]  ;;  %s803_s26 = sshll.u32 %s875_s19, 4  ;;  %s804_s26 = int_to_ptr.vmem [resolvable:$false] %s803_s26 }
  0x5f   : > { %v632_v32 = vpack.c.bf16 %v290_v29, %v288_v28  ;;  %v634_v33 = vpack.c.bf16 %v295_v31, %v293_v30  ;;  %v292_v34 = vld [vmem:[%s1045_s25 + $0xa0] sm:$0xff]  ;;  %v294_v35 = vld [vmem:[%s1045_s25 + $0xb0] sm:$0xff]  ;;  %v297_v36 = vld [vmem:[%s1045_s25 + $0xc8] sm:$0xff]  ;;  %s805_s29 = scalar_lea.vmem %s804_s26, 512  ;;  %p806_p0 = scmp.lt.s32.totalorder %s1129_s13, %s804_s26 }
  0x60   : > { %v299_v37 = vld [vmem:[%s1045_s25 + $0xd8] sm:$0xff]  ;;  %v636_v38 = vpack.c.bf16 %v294_v35, %v292_v34  ;;  %v296_v40 = vld [vmem:[%s1045_s25 + $0xc0] sm:$0xff]  ;;  %v298_v41 = vld [vmem:[%s1045_s25 + $0xd0] sm:$0xff] }
  0x61   : > { %v638_v39 = vpack.c.bf16 %v299_v37, %v297_v36  ;;  %v301_v42 = vld [vmem:[%s1045_s25 + $0xe8] sm:$0xff]  ;;  %v303_v43 = vld [vmem:[%s1045_s25 + $0xf8] sm:$0xff]  ;;  %v640_v44 = vpack.c.bf16 %v298_v41, %v296_v40  ;;  %v300_v46 = vld [vmem:[%s1045_s25 + $0xe0] sm:$0xff] }
  0x62   : > { %v642_v45 = vpack.c.bf16 %v303_v43, %v301_v42  ;;  %v302_v47 = vld [vmem:[%s1045_s25 + $0xf0] sm:$0xff]  ;;  %v305_v48 = vld [vmem:[%s1045_s25 + $0x108] sm:$0xff]  ;;  %v307_v49 = vld [vmem:[%s1045_s25 + $0x118] sm:$0xff] }
  0x63   : > { %621 = vmatpush1.bf16.xpose.msra.mxu0 %v620_v13  ;;  %v644_v50 = vpack.c.bf16 %v302_v47, %v300_v46  ;;  %v646_v51 = vpack.c.bf16 %v307_v49, %v305_v48  ;;  %v304_v52 = vld [vmem:[%s1045_s25 + $0x100] sm:$0xff]  ;;  %v306_v53 = vld [vmem:[%s1045_s25 + $0x110] sm:$0xff]  ;;  %v309_v54 = vld [vmem:[%s1045_s25 + $0x128] sm:$0xff] }
  0x64   : > { %623 = vmatprep.subr.bf16.mxu0 %v622_v14  ;;  %v311_v55 = vld [vmem:[%s1045_s25 + $0x138] sm:$0xff]  ;;  %v648_v56 = vpack.c.bf16 %v306_v53, %v304_v52  ;;  %v308_v58 = vld [vmem:[%s1045_s25 + $0x120] sm:$0xff]  ;;  %v310_v59 = vld [vmem:[%s1045_s25 + $0x130] sm:$0xff] }
  0x65   : > { %v650_v57 = vpack.c.bf16 %v311_v55, %v309_v54  ;;  %v313_v60 = vld [vmem:[%s1045_s25 + $0x148] sm:$0xff]  ;;  %v315_v61 = vld [vmem:[%s1045_s25 + $0x158] sm:$0xff]  ;;  %v652_v62 = vpack.c.bf16 %v310_v59, %v308_v58  ;;  %v312_v0 = vld [vmem:[%s1045_s25 + $0x140] sm:$0xff] }
  0x66   : > { %v654_v63 = vpack.c.bf16 %v315_v61, %v313_v60  ;;  %v314_v1 = vld [vmem:[%s1045_s25 + $0x150] sm:$0xff]  ;;  %v317_v2 = vld [vmem:[%s1045_s25 + $0x168] sm:$0xff]  ;;  %v319_v3 = vld [vmem:[%s1045_s25 + $0x178] sm:$0xff] }
  0x67   : > { %v656_v4 = vpack.c.bf16 %v314_v1, %v312_v0  ;;  %v658_v5 = vpack.c.bf16 %v319_v3, %v317_v2  ;;  %v316_v6 = vld [vmem:[%s1045_s25 + $0x160] sm:$0xff]  ;;  %v318_v7 = vld [vmem:[%s1045_s25 + $0x170] sm:$0xff]  ;;  %v321_v8 = vld [vmem:[%s1045_s25 + $0x188] sm:$0xff]  ;;  %v447_v3 = vlaneseq }
  0x68   : > { %v323_v9 = vld [vmem:[%s1045_s25 + $0x198] sm:$0xff]  ;;  %v660_v10 = vpack.c.bf16 %v318_v7, %v316_v6  ;;  %v320_v12 = vld [vmem:[%s1045_s25 + $0x180] sm:$0xff]  ;;  %v322_v13 = vld [vmem:[%s1045_s25 + $0x190] sm:$0xff] }
  0x69   : > { %v662_v11 = vpack.c.bf16 %v323_v9, %v321_v8  ;;  %v325_v14 = vld [vmem:[%s1045_s25 + $0x1a8] sm:$0xff]  ;;  %v327_v15 = vld [vmem:[%s1045_s25 + $0x1b8] sm:$0xff]  ;;  %v664_v16 = vpack.c.bf16 %v322_v13, %v320_v12  ;;  %v324_v18 = vld [vmem:[%s1045_s25 + $0x1a0] sm:$0xff]  ;;  %v448_v7 = vshrl.u32 %v447_v3, 7 }
  0x6a   : > { %v666_v17 = vpack.c.bf16 %v327_v15, %v325_v14  ;;  %v331_v21 = vld [vmem:[%s1045_s25 + $0x1d8] sm:$0xff]  ;;  %v328_v24 = vld [vmem:[%s1045_s25 + $0x1c0] sm:$0xff]  ;;  %v330_v25 = vld [vmem:[%s1045_s25 + $0x1d0] sm:$0xff] }
  0x6b   : > { %625 = vmatpush1.bf16.xpose.msra.mxu0 %v624_v19  ;;  %v326_v19 = vld [vmem:[%s1045_s25 + $0x1b0] sm:$0xff]  ;;  %v672_v28 = vpack.c.bf16 %v330_v25, %v328_v24  ;;  %v332_v30 = vld [vmem:[%s1045_s25 + $0x1e0] sm:$0xff]  ;;  %v449_v8 = vsub.s32 0, %v448_v7 }
  0x6c   : > { %627 = vmatprep.subr.bf16.mxu0 %v626_v20  ;;  %v329_v20 = vld [vmem:[%s1045_s25 + $0x1c8] sm:$0xff]  ;;  %v668_v22 = vpack.c.bf16 %v326_v19, %v324_v18  ;;  %v334_v31 = vld [vmem:[%s1045_s25 + $0x1f0] sm:$0xff] }
  0x6d   : > { %v670_v23 = vpack.c.bf16 %v331_v21, %v329_v20  ;;  %v445_v9 = vld [vmem:[%s262_s12] sm:$0x3] }
  0x6e   : > { %v450_v12 = vrot.slane %v445_v9, %v449_v8 }
  0x73   : > { %629 = vmatpush1.bf16.xpose.msra.mxu0 %v628_v26  ;;  %v333_v26 = vld [vmem:[%s1045_s25 + $0x1e8] sm:$0xff] }
  0x74   : > { %631 = vmatprep.subr.bf16.mxu0 %v630_v27  ;;  %v335_v27 = vld [vmem:[%s1045_s25 + $0x1f8] sm:$0xff]  ;;  %s799_s25 = scalar_lea.vmem %s1129_s13, 256 }
  0x75   : > { %v674_v29 = vpack.c.bf16 %v335_v27, %v333_v26  ;;  %p800_p10 = scmp.ne.s32.totalorder %s1129_s13, %s799_s25  ;;  %p807_p6 = scmp.lt.s32.totalorder %s805_s29, %s799_s25 }
  0x77   : > { %p801_p4 = pnand %p800_p10, %p1194_p2  ;;  %p808_p13 = por %p807_p6, %p806_p0 }
  0x79   : > { %p802_p5 = pneg %p801_p4 }
  0x7b   : > { %633 = vmatpush1.bf16.xpose.msra.mxu0 %v632_v32  ;;  %v676_v32 = vpack.c.bf16 %v334_v31, %v332_v30  ;;  %p809_p7 = pnand %p808_p13, %p802_p5 }
  0x7c   : > { %635 = vmatprep.subr.bf16.mxu0 %v634_v33  ;;  %v270_v33 = vld [vmem:[#allocation2] sm:$0xff] }
  0x83   : > { %637 = vmatpush1.bf16.xpose.msra.mxu0 %v636_v38 }
  0x84   : > { %639 = vmatprep.subr.bf16.mxu0 %v638_v39 }
  0x8b   : > { %641 = vmatpush1.bf16.xpose.msra.mxu0 %v640_v44 }
  0x8c   : > { %643 = vmatprep.subr.bf16.mxu0 %v642_v45 }
  0x93   : > { %645 = vmatpush1.bf16.xpose.msra.mxu0 %v644_v50 }
  0x94   : > { %647 = vmatprep.subr.bf16.mxu0 %v646_v51 }
  0x9b   : > { %649 = vmatpush1.bf16.xpose.msra.mxu0 %v648_v56 }
  0x9c   : > { %651 = vmatprep.subr.bf16.mxu0 %v650_v57 }
  0xa3   : > { %653 = vmatpush1.bf16.xpose.msra.mxu0 %v652_v62 }
  0xa4   : > { %655 = vmatprep.subr.bf16.mxu0 %v654_v63 }
  0xab   : > { %657 = vmatpush1.bf16.xpose.msra.mxu0 %v656_v4 }
  0xac   : > { %659 = vmatprep.subr.bf16.mxu0 %v658_v5 }
  0xb3   : > { %661 = vmatpush1.bf16.xpose.msra.mxu0 %v660_v10  ;;  %v453_v10 = vsub.s32 1, %v448_v7 }
  0xb4   : > { %663 = vmatprep.subr.bf16.mxu0 %v662_v11  ;;  %v459_v11 = vld [vmem:[%s267_s30] sm:$0x3] }
  0xb5   : > { %v454_v14 = vrot.slane %v445_v9, %v453_v10  ;;  %v468_v19 = vrot.slane %v459_v11, %v453_v10 }
  0xbb   : > { %665 = vmatpush1.bf16.xpose.msra.mxu0 %v664_v16 }
  0xbc   : > { %667 = vmatprep.subr.bf16.mxu0 %v666_v17  ;;  %v464_v17 = vrot.slane %v459_v11, %v449_v8 }
  0xc3   : > { %669 = vmatpush1.bf16.xpose.msra.mxu0 %v668_v22 }
  0xc4   : > { %671 = vmatprep.subr.bf16.mxu0 %v670_v23 }
  0xcb   : > { %673 = vmatpush1.bf16.xpose.msra.mxu0 %v672_v28 }
  0xcc   : > { %675 = vmatprep.subr.bf16.mxu0 %v674_v29 }
  0xd3   : > { %677 = vmatpush1.bf16.xpose.msra.mxu0 %v676_v32 }
  0xda   : > { %401 = vmatmul.mubr.f32.vlgmr.msra.gmra.mrb[0].mxu0 %v270_v33 }
 0x1ad   : > { %v402_v34 = vpop.f32.mrb[0].mxu0 }
 0x1ae   : > { %v407_v35 = vrot.slane %v402_v34, 4  ;;  %v404_v36 = vpop.f32.mrb[1].mxu0 }
 0x1af   : > { %v413_v37 = vrot.slane %v404_v36, 4 }
 0x1b0   : > { %v408_v38 = vadd.f32 %v407_v35, %v402_v34 }
 0x1b1   : > { %v414_v39 = vadd.f32 %v413_v37, %v404_v36 }
 0x1b2   : > { %v409_v40 = vrot.slane %v408_v38, 2 }
 0x1b3   : > { %v415_v41 = vrot.slane %v414_v39, 2 }
 0x1b4   : > { %v410_v42 = vadd.f32 %v409_v40, %v408_v38 }
 0x1b5   : > { %v416_v43 = vadd.f32 %v415_v41, %v414_v39 }
 0x1b6   : > { %v411_v44 = vrot.slane %v410_v42, 1 }
 0x1b7   : > { %v417_v45 = vrot.slane %v416_v43, 1 }
 0x1b8   : > { %v412_v46 = vadd.f32 %v411_v44, %v410_v42 }
 0x1b9   : > { %v418_v47 = vadd.f32 %v417_v45, %v416_v43 }
 0x1ba   : > { %v419_v48 = vmul.f32 0.125, %v412_v46 }
 0x1bb   : > { %v420_v49 = vmul.f32 0.125, %v418_v47 }
 0x1bc   : > { %v421_v50 = vsub.f32 %v402_v34, %v419_v48 }
 0x1bd   : > { %v422_v51 = vsub.f32 %v404_v36, %v420_v49 }
 0x1be   : > { %v423_v52 = vmul.f32 %v421_v50, %v421_v50 }
 0x1bf   : > { %v424_v53 = vmul.f32 %v422_v51, %v422_v51 }
 0x1c0   : > { %v425_v54 = vrot.slane %v423_v52, 4 }
 0x1c1   : > { %v431_v55 = vrot.slane %v424_v53, 4 }
 0x1c2   : > { %v426_v56 = vadd.f32 %v425_v54, %v423_v52 }
 0x1c3   : > { %v432_v57 = vadd.f32 %v431_v55, %v424_v53 }
 0x1c4   : > { %v427_v58 = vrot.slane %v426_v56, 2 }
 0x1c5   : > { %v433_v59 = vrot.slane %v432_v57, 2 }
 0x1c6   : > { %v428_v60 = vadd.f32 %v427_v58, %v426_v56 }
 0x1c7   : > { %v434_v61 = vadd.f32 %v433_v59, %v432_v57 }
 0x1c8   : > { %v429_v62 = vrot.slane %v428_v60, 1 }
 0x1c9   : > { %v435_v63 = vrot.slane %v434_v61, 1 }
 0x1ca   : > { %v430_v0 = vadd.f32 %v429_v62, %v428_v60 }
 0x1cb   : > { %v436_v1 = vadd.f32 %v435_v63, %v434_v61 }
 0x1cc   : > { %v437_v2 = vmul.f32 0.125, %v430_v0 }
 0x1cd   : > { %v438_v4 = vmul.f32 0.125, %v436_v1 }
 0x1ce   : > { %v439_v5 = vadd.f32 1e-05, %v437_v2 }
 0x1cf   : > { %v440_v6 = vadd.f32 1e-05, %v438_v4 }
 0x1d0   : > { %737 = vrsqrt.f32 %v439_v5 }
 0x1d1   : > { %739 = vrsqrt.f32 %v440_v6 }
 0x1da   : > { %v738_v13 = vpop.eup %737 }
 0x1db   : > { %v740_v15 = vpop.eup %739  ;;  %v443_v16 = vmul.f32 %v738_v13, %v421_v50 }
 0x1dc   : > { %v444_v18 = vmul.f32 %v740_v15, %v422_v51 }
 0x1dd   : > { %v457_v20 = vmul.f32 %v450_v12, %v443_v16 }
 0x1de   : > { %v458_v21 = vmul.f32 %v454_v14, %v444_v18 }
 0x1df   : > { %v471_v22 = vadd.f32 %v464_v17, %v457_v20 }
 0x1e0   : > { %v472_v23 = vadd.f32 %v468_v19, %v458_v21 }
 0x1e1   : > { %v473_v24 = vmax.f32 %v471_v22, 0.0 }
 0x1e2   : > { %v474_v25 = vmax.f32 %v472_v23, 0.0 }
 0x1e3   : > { %475 = vst [vmem:[%s257_s11] sm:$0xff] %v473_v24 }
 0x1e4   : > { %476 = vst [vmem:[%s257_s11 + $0x8] sm:$0xff] %v474_v25 }
 0x1e5   : > { %812 = shalt.err (!%p809_p7)
}
 0x1e6   : > { %s813_s5 = scalar_lea.hbm %s1127_s9, 256  ;;  %s817_s20 = scalar_lea.hbm %s1175_s4, 512 }
 0x1e7   : > { %p814_p3 = scmp.ne.s32.totalorder %s1127_s9, %s813_s5  ;;  %p818_p8 = scmp.lt.u32.totalorder %s1127_s9, %s1175_s4 }
 0x1e8   : > { %p819_p11 = scmp.lt.u32.totalorder %s817_s20, %s813_s5  ;;  %p821_p10 = scmp.lt.u32.totalorder %s813_s5, %s1127_s9 }
 0x1e9   : > { %p815_p12 = pnand %p814_p3, %p1194_p2 }
 0x1ea   : > { %p820_p9 = por %p819_p11, %p818_p8 }
 0x1eb   : > { %p816_p1 = pneg %p815_p12 }
 0x1ec   : > { %p822_p4 = por %p821_p10, %p820_p9 }
 0x1ee   : > { %p823_p5 = pnand %p822_p4, %p816_p1 }
 0x1f0   : > { %826 = shalt.err (!%p823_p5)
}
 0x1f1   : > { %684 = dma.vmem_to_hbm [thread:$0]  (%p1194_p2), %s1129_s13, 256, %s1127_s9, %s478_s23  }
 0x1f2 PF: > { %s504_s7 = sand.u32 1, %s857_s15   ;;  %p1195_p0 = scmp.ne.s32.totalorder %s1184_s28, 0 }
 0x1f3   : > { %p1196_p6 = scmp.ge.s32.totalorder %s869_s18, 2  ;;  %s505_s10 = scalar_lea.sflag [#allocation4], %s504_s7 }
 0x1f5   : > { %p695_p13 = pnand %p1196_p6, %p1195_p0 }
 0x1f7   : > { %852 = dma.done.wait (!%p695_p13), %s505_s10, 256  }
 0x1f8   : > { %854 = vsyncadd (!%p695_p13), %s505_s10, 4294967040  ;;  %p18_p7 = scmp.ge.s32.totalorder %s926_s21, 4   ;;  %s1197_s15 = smov %s861_s16 }
 0x1f9   : > { %s1198_s16 = smov %s865_s17  ;;  %s1199_s17 = smov %s938_s24 }
 0x1fa   : > { %s1200_s18 = smov %s926_s21  ;;  %20 = sbr.rel (!%p18_p7) target bundleno = 6 (0x6), region = 92 }
 0x201   :  { %510 = vsyncpa [#allocation3], 1 }
 0x202   :  { %512 = vsyncpa [#allocation3 + $0x1], 1 }
 0x203   :  { %513 = vsyncpa [#allocation6], 1 }
 0x204   :  { %515 = vsyncpa [#allocation6 + $0x1], 1 }
 0x205   :  { %516 = vsyncpa [#allocation4], 1 }
 0x206   :  { %518 = vsyncpa [#allocation4 + $0x1], 1 }

</bundles_post_ra>
